<compile_context>
chip_gen: v7x
topology: tpu7x:2x2x1
jax: 0.10.0
libtpu: 0.0.40
codegen_flags: <defaults>
</compile_context>

<pallas_src>
import functools
from math import sqrt

import jax
import jax.numpy as jnp
from jax import lax
from jax.experimental import pallas as pl
from jax.experimental.pallas import tpu as pltpu

_NEG_BIG = -1e30  # finite "minus infinity" (avoids inf-inf NaNs)


def _flash_attention_kernel(q_ref, k_ref, v_ref, o_ref, m_ref, l_ref, acc_ref,
                            *, scale, kv_len, block_s, mask_kv, compute_dtype):
    # q_ref: (bl, E), k_ref: (bs, E), v_ref: (bs, D), o_ref: (bl, D)
    # scratch: m_ref/l_ref: (bl, 1) f32, acc_ref: (bl, D) f32
    s_idx = pl.program_id(3)
    num_s = pl.num_programs(3)

    @pl.when(s_idx == 0)
    def _init():
        m_ref[...] = jnp.full(m_ref.shape, _NEG_BIG, dtype=m_ref.dtype)
        l_ref[...] = jnp.zeros_like(l_ref)
        acc_ref[...] = jnp.zeros_like(acc_ref)

    # Fold the scale into the small q operand in f32, THEN cast to the MXU
    # dtype (bf16 by default) so f32 callers also get the fast MXU path.
    q = (q_ref[...].astype(jnp.float32) * scale).astype(compute_dtype)  # (bl, E)
    k = k_ref[...].astype(compute_dtype)                                # (bs, E)
    v = v_ref[...].astype(compute_dtype)                                # (bs, D)

    # scores[l, s] = sum_e q[l, e] * k[s, e]  (contract last dims, no k.T)
    s = lax.dot_general(q, k, (((1,), (1,)), ((), ())),
                        preferred_element_type=jnp.float32)             # (bl, bs) f32

    if mask_kv:
        # Mask padded key columns (only emitted when S was padded).
        col = lax.broadcasted_iota(jnp.int32, s.shape, 1) + s_idx * block_s
        s = jnp.where(col < kv_len, s, _NEG_BIG)

    m_prev = m_ref[...]                                                  # (bl, 1)
    m_new = jnp.maximum(m_prev, jnp.max(s, axis=-1, keepdims=True))
    alpha = jnp.exp(m_prev - m_new)                                      # old-stat rescale
    p = jnp.exp(s - m_new)                                               # (bl, bs) f32

    l_ref[...] = alpha * l_ref[...] + jnp.sum(p, axis=-1, keepdims=True)
    acc_ref[...] = alpha * acc_ref[...] + lax.dot_general(
        p.astype(compute_dtype), v, (((1,), (0,)), ((), ())),
        preferred_element_type=jnp.float32)                              # (bl, D) f32
    m_ref[...] = m_new

    @pl.when(s_idx == num_s - 1)
    def _finalize():
        # Exact divide: runs once per L-block, so it is essentially free and
        # avoids the approx-reciprocal accuracy hit of the previous version.
        o_ref[...] = (acc_ref[...] / l_ref[...]).astype(o_ref.dtype)


def _round_up(x, m):
    return ((x + m - 1) // m) * m


def _lane_pad(n):
    return max(128, _round_up(n, 128))


def _vmem_capacity_bytes():
    try:
        info = pltpu.get_tpu_info()
        cap = getattr(info, "vmem_capacity_bytes", None)
        if cap:
            return int(cap)
    except Exception:
        pass
    return 64 * 1024 * 1024  # conservative fallback (v7x per-core VMEM)


def _vmem_bytes_estimate(bl, bs, E, D, itemsize):
    """Rough per-step VMEM footprint: double-buffered q/k/v/o tiles, f32
    scratch (m/l pad their lane dim to 128), and the f32 (bl, bs) score/prob
    intermediates (plus slack for compiler temporaries)."""
    e_p, d_p = _lane_pad(E), _lane_pad(D)
    tiles = 2 * (bl * e_p + bs * e_p + bs * d_p + bl * d_p) * itemsize
    scratch = (2 * bl * 128 + bl * d_p) * 4
    temps = 3 * bl * bs * 4
    return tiles + scratch + temps


def full_attention(queries, keys, values, scale=None,
                   block_l=512, block_s=None, mxu_dtype=jnp.bfloat16):
    """queries: [B, L, H, E], keys: [B, S, H, E], values: [B, S, H, D]."""
    B, L, H, E = queries.shape
    _, S, _, D = values.shape
    scale = float(scale) if scale is not None else 1.0 / sqrt(E)
    itemsize = queries.dtype.itemsize
    compute_dtype = mxu_dtype if mxu_dtype is not None else queries.dtype

    # Budget derived from the actual chip: ~64 MiB on v7x, ~128 MiB on v5e/v6e.
    vmem_cap = _vmem_capacity_bytes()
    vmem_limit = int(vmem_cap * 3 // 4)       # raise the scoped limit explicitly
    tile_budget = int(vmem_cap * 0.45)        # headroom for spills / pipeline

    # L (query) tile — the primary arithmetic-intensity knob.
    bl = min(block_l, _round_up(L, 8))
    l_pad = _round_up(L, bl)

    # S (key/value) tile — prefer full K/V residency across the reduction when
    # it fits the VMEM budget (K/V then DMA'd once per (b, h)); otherwise shrink.
    if block_s is not None:
        bs = min(block_s, _round_up(S, 8))
    else:
        bs = _round_up(S, 8)
        if _vmem_bytes_estimate(bl, bs, E, D, itemsize) > tile_budget:
            bs = 2048
            while bs > 256 and _vmem_bytes_estimate(bl, bs, E, D, itemsize) > tile_budget:
                bs //= 2
            bs = min(bs, _round_up(S, 8))
    s_pad = _round_up(S, bs)
    mask_kv = (s_pad != S)

    # One-time XLA relayout: heads become a leading (grid) axis, so the kernel
    # never slices heads out of the lane dimension.
    q = jnp.transpose(queries, (0, 2, 1, 3))   # [B, H, L, E]
    k = jnp.transpose(keys, (0, 2, 1, 3))      # [B, H, S, E]
    v = jnp.transpose(values, (0, 2, 1, 3))    # [B, H, S, D]
    if l_pad != L:
        q = jnp.pad(q, ((0, 0), (0, 0), (0, l_pad - L), (0, 0)))
    if s_pad != S:
        k = jnp.pad(k, ((0, 0), (0, 0), (0, s_pad - S), (0, 0)))
        v = jnp.pad(v, ((0, 0), (0, 0), (0, s_pad - S), (0, 0)))

    grid = (B, H, l_pad // bl, s_pad // bs)

    kernel = functools.partial(
        _flash_attention_kernel, scale=scale, kv_len=S, block_s=bs,
        mask_kv=mask_kv, compute_dtype=compute_dtype)

    cost = pl.CostEstimate(
        flops=int(2 * B * H * L * S * (E + D)),
        transcendentals=int(B * H * L * S),
        bytes_accessed=int(B * H * (L * E + S * E + S * D + L * D) * itemsize),
    )

    out = pl.pallas_call(
        kernel,
        out_shape=jax.ShapeDtypeStruct((B, H, l_pad, D), queries.dtype),
        grid_spec=pltpu.PrefetchScalarGridSpec(
            num_scalar_prefetch=0,
            grid=grid,
            in_specs=[
                pl.BlockSpec((None, None, bl, E), lambda b, h, l, s: (b, h, l, 0)),
                pl.BlockSpec((None, None, bs, E), lambda b, h, l, s: (b, h, s, 0)),
                pl.BlockSpec((None, None, bs, D), lambda b, h, l, s: (b, h, s, 0)),
            ],
            # Same output block across the S axis => resident accumulator tile.
            out_specs=pl.BlockSpec((None, None, bl, D), lambda b, h, l, s: (b, h, l, 0)),
            scratch_shapes=[
                pltpu.VMEM((bl, 1), jnp.float32),   # running max m
                pltpu.VMEM((bl, 1), jnp.float32),   # running denom l
                pltpu.VMEM((bl, D), jnp.float32),   # output accumulator
            ],
        ),
        compiler_params=pltpu.CompilerParams(
            dimension_semantics=("parallel", "parallel", "parallel", "arbitrary"),
            vmem_limit_bytes=vmem_limit,
        ),
        cost_estimate=cost,
    )(q, k, v)

    out = out[:, :, :L, :]                       # drop padded query rows
    return jnp.transpose(out, (0, 2, 1, 3))      # back to [B, L, H, D]


def _reference(queries, keys, values, scale=None):
    # True-f32 reference (HIGHEST precision so the baseline itself is exact).
    E = queries.shape[-1]
    scale = scale if scale is not None else 1.0 / sqrt(E)
    scores = jnp.einsum("blhe,bshe->bhls",
                        queries.astype(jnp.float32), keys.astype(jnp.float32),
                        precision=lax.Precision.HIGHEST)
    a = jax.nn.softmax(scale * scores, axis=-1)
    return jnp.einsum("bhls,bshd->blhd", a, values.astype(jnp.float32),
                      precision=lax.Precision.HIGHEST)


if __name__ == "__main__":
    B, L, S, H, E, D = 2, 8, 8, 4, 32, 32
    key = jax.random.PRNGKey(0)
    kq, kk, kv = jax.random.split(key, 3)
    queries = jax.random.normal(kq, (B, L, H, E), dtype=jnp.float32)
    keys = jax.random.normal(kk, (B, S, H, E), dtype=jnp.float32)
    values = jax.random.normal(kv, (B, S, H, D), dtype=jnp.float32)

    ref = _reference(queries, keys, values)

    # 1) Default fast path: bf16 MXU operands, f32 accumulation.
    out = jax.block_until_ready(full_attention(queries, keys, values))
    assert out.shape == (B, L, H, D)
    err = jnp.max(jnp.abs(out - ref))
    assert jnp.allclose(out, ref, atol=2e-2, rtol=2e-2), (
        f"bf16-MXU path mismatch vs reference (max abs err = {err})")

    # 2) Exact-dtype path (f32 matmuls, slower): tight tolerance.
    out_f32 = jax.block_until_ready(
        full_attention(queries, keys, values, mxu_dtype=None))
    err_f32 = jnp.max(jnp.abs(out_f32 - ref))
    assert jnp.allclose(out_f32, ref, atol=1e-3, rtol=1e-3), (
        f"f32 path mismatch vs reference (max abs err = {err_f32})")

    # 3) Ragged shape exercising the padded / masked key path.
    B2, L2, S2, H2 = 1, 100, 75, 2
    kq2, kk2, kv2 = jax.random.split(jax.random.PRNGKey(1), 3)
    q2 = jax.random.normal(kq2, (B2, L2, H2, E), dtype=jnp.float32)
    k2 = jax.random.normal(kk2, (B2, S2, H2, E), dtype=jnp.float32)
    v2 = jax.random.normal(kv2, (B2, S2, H2, D), dtype=jnp.float32)
    out2 = jax.block_until_ready(full_attention(q2, k2, v2))
    ref2 = _reference(q2, k2, v2)
    err2 = jnp.max(jnp.abs(out2 - ref2))
    assert out2.shape == (B2, L2, H2, D)
    assert jnp.allclose(out2, ref2, atol=2e-2, rtol=2e-2), (
        f"masked path mismatch vs reference (max abs err = {err2})")

    print("KERNEL_OK")
</pallas_src>

<mosaic_0001>
module attributes {stable_mosaic.version = 11 : i64} {
  func.func @_flash_attention_kernel(%arg0: i32, %arg1: i32, %arg2: i32, %arg3: i32, %arg4: memref<1x1x8x32xf32, #tpu.memory_space<vmem>>, %arg5: memref<1x1x8x32xf32, #tpu.memory_space<vmem>>, %arg6: memref<1x1x8x32xf32, #tpu.memory_space<vmem>>, %arg7: memref<1x1x8x32xf32, #tpu.memory_space<vmem>>, %arg8: memref<8x1xf32, #tpu.memory_space<vmem>>, %arg9: memref<8x1xf32, #tpu.memory_space<vmem>>, %arg10: memref<8x32xf32, #tpu.memory_space<vmem>>) attributes {dimension_semantics = [#tpu.dimension_semantics<parallel>, #tpu.dimension_semantics<parallel>, #tpu.dimension_semantics<parallel>, #tpu.dimension_semantics<arbitrary>], iteration_bounds = array<i64: 2, 4, 1, 1>, scalar_prefetch = 0 : i64, scratch_operands = 3 : i64, tpu.core_type = #tpu.core_type<tc>, window_params = [{transform_indices = @transform_0, window_bounds = array<i64: 1, 1, 8, 32>}, {transform_indices = @transform_1, window_bounds = array<i64: 1, 1, 8, 32>}, {transform_indices = @transform_2, window_bounds = array<i64: 1, 1, 8, 32>}, {transform_indices = @transform_3, window_bounds = array<i64: 1, 1, 8, 32>}]} {
    %c0_i32 = arith.constant 0 : i32
    %0 = arith.cmpi eq, %arg3, %c0_i32 : i32
    %1 = arith.extui %0 : i1 to i32
    %c0_i32_0 = arith.constant 0 : i32
    %2 = arith.cmpi ne, %1, %c0_i32_0 : i32
    scf.if %2 {
      %cst_30 = arith.constant -1.000000e+30 : f32
      %41 = vector.broadcast %cst_30 : f32 to vector<8x1xf32>
      %c0_31 = arith.constant 0 : index
      %c0_32 = arith.constant 0 : index
      %42 = vector.load %arg8[%c0_31, %c0_32] : memref<8x1xf32, #tpu.memory_space<vmem>>, vector<8x1xf32>
      tpu.vector_store %arg8[%c0_31, %c0_32], %41 {strides = array<i32>} : memref<8x1xf32, #tpu.memory_space<vmem>>, vector<8x1xf32>,
      %cst_33 = arith.constant 0.000000e+00 : f32
      %43 = vector.broadcast %cst_33 : f32 to vector<8x1xf32>
      %c0_34 = arith.constant 0 : index
      %c0_35 = arith.constant 0 : index
      %44 = vector.load %arg9[%c0_34, %c0_35] : memref<8x1xf32, #tpu.memory_space<vmem>>, vector<8x1xf32>
      tpu.vector_store %arg9[%c0_34, %c0_35], %43 {strides = array<i32>} : memref<8x1xf32, #tpu.memory_space<vmem>>, vector<8x1xf32>,
      %cst_36 = arith.constant 0.000000e+00 : f32
      %45 = vector.broadcast %cst_36 : f32 to vector<8x32xf32>
      %c0_37 = arith.constant 0 : index
      %c0_38 = arith.constant 0 : index
      %46 = vector.load %arg10[%c0_37, %c0_38] : memref<8x32xf32, #tpu.memory_space<vmem>>, vector<8x32xf32>
      tpu.vector_store %arg10[%c0_37, %c0_38], %45 {strides = array<i32>} : memref<8x32xf32, #tpu.memory_space<vmem>>, vector<8x32xf32>,
    } else {
    }
    %c0 = arith.constant 0 : index
    %c0_1 = arith.constant 0 : index
    %c0_2 = arith.constant 0 : index
    %c0_3 = arith.constant 0 : index
    %3 = vector.load %arg4[%c0, %c0_1, %c0_2, %c0_3] : memref<1x1x8x32xf32, #tpu.memory_space<vmem>>, vector<1x1x8x32xf32>
    %4 = vector.shape_cast %3 : vector<1x1x8x32xf32> to vector<8x32xf32>
    %cst = arith.constant 0.176776692 : f32
    %5 = vector.broadcast %cst : f32 to vector<8x32xf32>
    %6 = arith.mulf %4, %5 : vector<8x32xf32>
    %7 = arith.truncf %6 : vector<8x32xf32> to vector<8x32xbf16>
    %c0_4 = arith.constant 0 : index
    %c0_5 = arith.constant 0 : index
    %c0_6 = arith.constant 0 : index
    %c0_7 = arith.constant 0 : index
    %8 = vector.load %arg5[%c0_4, %c0_5, %c0_6, %c0_7] : memref<1x1x8x32xf32, #tpu.memory_space<vmem>>, vector<1x1x8x32xf32>
    %9 = vector.shape_cast %8 : vector<1x1x8x32xf32> to vector<8x32xf32>
    %10 = arith.truncf %9 : vector<8x32xf32> to vector<8x32xbf16>
    %c0_8 = arith.constant 0 : index
    %c0_9 = arith.constant 0 : index
    %c0_10 = arith.constant 0 : index
    %c0_11 = arith.constant 0 : index
    %11 = vector.load %arg6[%c0_8, %c0_9, %c0_10, %c0_11] : memref<1x1x8x32xf32, #tpu.memory_space<vmem>>, vector<1x1x8x32xf32>
    %12 = vector.shape_cast %11 : vector<1x1x8x32xf32> to vector<8x32xf32>
    %13 = arith.truncf %12 : vector<8x32xf32> to vector<8x32xbf16>
    %cst_12 = arith.constant dense<0.000000e+00> : vector<8x8xf32>
    %14 = tpu.matmul %7, %10, %cst_12 {dimension_numbers = #tpu.dot_dimension_numbers<[1], [1], [0], [0], [0, 0, 1, 0], [], []>} : vector<8x32xbf16>, vector<8x32xbf16>, vector<8x8xf32> -> vector<8x8xf32>
    %c0_13 = arith.constant 0 : index
    %c0_14 = arith.constant 0 : index
    %15 = vector.load %arg8[%c0_13, %c0_14] : memref<8x1xf32, #tpu.memory_space<vmem>>, vector<8x1xf32>
    %cst_15 = arith.constant dense<0xFF800000> : vector<8xf32>
    %16 = vector.multi_reduction <maximumf>, %14, %cst_15 [1] : vector<8x8xf32> to vector<8xf32>
    %17 = vector.shape_cast %16 : vector<8xf32> to vector<8x1xf32>
    %18 = arith.maximumf %15, %17 : vector<8x1xf32>
    %19 = arith.subf %15, %18 : vector<8x1xf32>
    %20 = math.exp %19 : vector<8x1xf32>
    %21 = vector.broadcast %18 : vector<8x1xf32> to vector<8x8xf32>
    %22 = arith.subf %14, %21 : vector<8x8xf32>
    %23 = math.exp %22 : vector<8x8xf32>
    %c0_16 = arith.constant 0 : index
    %c0_17 = arith.constant 0 : index
    %24 = vector.load %arg9[%c0_16, %c0_17] : memref<8x1xf32, #tpu.memory_space<vmem>>, vector<8x1xf32>
    %25 = arith.mulf %20, %24 : vector<8x1xf32>
    %cst_18 = arith.constant dense<0.000000e+00> : vector<8xf32>
    %26 = vector.multi_reduction <add>, %23, %cst_18 [1] : vector<8x8xf32> to vector<8xf32>
    %27 = vector.shape_cast %26 : vector<8xf32> to vector<8x1xf32>
    %28 = arith.addf %25, %27 : vector<8x1xf32>
    %c0_19 = arith.constant 0 : index
    %c0_20 = arith.constant 0 : index
    %29 = vector.load %arg9[%c0_19, %c0_20] : memref<8x1xf32, #tpu.memory_space<vmem>>, vector<8x1xf32>
    tpu.vector_store %arg9[%c0_19, %c0_20], %28 {strides = array<i32>} : memref<8x1xf32, #tpu.memory_space<vmem>>, vector<8x1xf32>,
    %c0_21 = arith.constant 0 : index
    %c0_22 = arith.constant 0 : index
    %30 = vector.load %arg10[%c0_21, %c0_22] : memref<8x32xf32, #tpu.memory_space<vmem>>, vector<8x32xf32>
    %31 = vector.broadcast %20 : vector<8x1xf32> to vector<8x32xf32>
    %32 = arith.mulf %31, %30 : vector<8x32xf32>
    %33 = arith.truncf %23 : vector<8x8xf32> to vector<8x8xbf16>
    %cst_23 = arith.constant dense<0.000000e+00> : vector<8x32xf32>
    %34 = tpu.matmul %33, %13, %cst_23 {dimension_numbers = #tpu.dot_dimension_numbers<[1], [0], [0], [1], [0, 0, 1, 1], [], []>} : vector<8x8xbf16>, vector<8x32xbf16>, vector<8x32xf32> -> vector<8x32xf32>
    %35 = arith.addf %32, %34 : vector<8x32xf32>
    %c0_24 = arith.constant 0 : index
    %c0_25 = arith.constant 0 : index
    %36 = vector.load %arg10[%c0_24, %c0_25] : memref<8x32xf32, #tpu.memory_space<vmem>>, vector<8x32xf32>
    tpu.vector_store %arg10[%c0_24, %c0_25], %35 {strides = array<i32>} : memref<8x32xf32, #tpu.memory_space<vmem>>, vector<8x32xf32>,
    %c0_26 = arith.constant 0 : index
    %c0_27 = arith.constant 0 : index
    %37 = vector.load %arg8[%c0_26, %c0_27] : memref<8x1xf32, #tpu.memory_space<vmem>>, vector<8x1xf32>
    tpu.vector_store %arg8[%c0_26, %c0_27], %18 {strides = array<i32>} : memref<8x1xf32, #tpu.memory_space<vmem>>, vector<8x1xf32>,
    %c0_i32_28 = arith.constant 0 : i32
    %38 = arith.cmpi eq, %arg3, %c0_i32_28 : i32
    %39 = arith.extui %38 : i1 to i32
    %c0_i32_29 = arith.constant 0 : i32
    %40 = arith.cmpi ne, %39, %c0_i32_29 : i32
    scf.if %40 {
      %c0_30 = arith.constant 0 : index
      %c0_31 = arith.constant 0 : index
      %41 = vector.load %arg10[%c0_30, %c0_31] : memref<8x32xf32, #tpu.memory_space<vmem>>, vector<8x32xf32>
      %c0_32 = arith.constant 0 : index
      %c0_33 = arith.constant 0 : index
      %42 = vector.load %arg9[%c0_32, %c0_33] : memref<8x1xf32, #tpu.memory_space<vmem>>, vector<8x1xf32>
      %43 = vector.broadcast %42 : vector<8x1xf32> to vector<8x32xf32>
      %44 = arith.divf %41, %43 : vector<8x32xf32>
      %c0_34 = arith.constant 0 : index
      %c0_35 = arith.constant 0 : index
      %c0_36 = arith.constant 0 : index
      %c0_37 = arith.constant 0 : index
      %45 = vector.load %arg7[%c0_34, %c0_35, %c0_36, %c0_37] : memref<1x1x8x32xf32, #tpu.memory_space<vmem>>, vector<1x1x8x32xf32>
      %46 = vector.shape_cast %45 : vector<1x1x8x32xf32> to vector<8x32xf32>
      %47 = vector.shape_cast %44 : vector<8x32xf32> to vector<1x1x8x32xf32>
      tpu.vector_store %arg7[%c0_34, %c0_35, %c0_36, %c0_37], %47 {strides = array<i32>} : memref<1x1x8x32xf32, #tpu.memory_space<vmem>>, vector<1x1x8x32xf32>,
    } else {
    }
    return
  }
  func.func @transform_0(%arg0: i32, %arg1: i32, %arg2: i32, %arg3: i32) -> (i32, i32, i32, i32) {
    %c0_i32 = arith.constant 0 : i32
    %c0_i32_0 = arith.constant 0 : i32
    return %arg0, %arg1, %arg2, %c0_i32 : i32, i32, i32, i32
  }
  func.func @transform_1(%arg0: i32, %arg1: i32, %arg2: i32, %arg3: i32) -> (i32, i32, i32, i32) {
    %c0_i32 = arith.constant 0 : i32
    %c0_i32_0 = arith.constant 0 : i32
    return %arg0, %arg1, %arg3, %c0_i32 : i32, i32, i32, i32
  }
  func.func @transform_2(%arg0: i32, %arg1: i32, %arg2: i32, %arg3: i32) -> (i32, i32, i32, i32) {
    %c0_i32 = arith.constant 0 : i32
    %c0_i32_0 = arith.constant 0 : i32
    return %arg0, %arg1, %arg3, %c0_i32 : i32, i32, i32, i32
  }
  func.func @transform_3(%arg0: i32, %arg1: i32, %arg2: i32, %arg3: i32) -> (i32, i32, i32, i32) {
    %c0_i32 = arith.constant 0 : i32
    %c0_i32_0 = arith.constant 0 : i32
    return %arg0, %arg1, %arg2, %c0_i32 : i32, i32, i32, i32
  }
}

</mosaic_0001>

<bundles_post_ra>
// kernel: tpu_custom_call.1
= control target key start
LH: loop header
LB: loop body
LE: loop exit
PB: predicated region body
PF: predicated region fallthrough
CT: control target
= control target key end

     0   :  { %s1288_s0 = inlined_call_operand.hbm [shape: f32[2,4,8,32], index: 0, kind: input, shape index: {}]   ;;  %s1289_s1 = inlined_call_operand.hbm [shape: f32[2,4,8,32], index: 1, kind: input, shape index: {}]   ;;  %s1290_s2 = inlined_call_operand.hbm [shape: f32[2,4,8,32], index: 2, kind: input, shape index: {}]   ;;  %s1291_s3 = inlined_call_operand.hbm [shape: f32[2,4,8,32], index: 3, kind: output, shape index: {}]  }
   0x1   :  { %1301 = sst [smem:[#allocation21_spill]] %s1289_s1 }
   0x2   :  { %8 = vsyncpa [#allocation6], 0 }
   0x3   :  { %10 = vsyncpa [#allocation6 + $0x1], 0 }
   0x4   :  { %11 = vsyncpa [#allocation9], 0 }
   0x5   :  { %13 = vsyncpa [#allocation9 + $0x1], 0 }
   0x6   :  { %14 = vsyncpa [#allocation7], 0 }
   0x7   :  { %16 = vsyncpa [#allocation7 + $0x1], 0  ;;  %s990_s12 = smov 0   ;;  %s992_s13 = smov 0  }
   0x8   :  { %s994_s14 = smov 0   ;;  %s996_s15 = smov 0  }
   0x9   :  { %s998_s16 = smov 0   ;;  %s1000_s17 = smov 0  }
   0xa   :  { %s1002_s18 = smov 0   ;;  %s1004_s19 = smov 0  }
   0xb LB: > { %1302 = sst [smem:[#allocation15_spill]] %s952_s17  ;;  %s1031_s20 = sadd.s32 4294967295, %s960_s19   ;;  %s960_s19 = sphi %s1004_s19, %s22_s19   ;;  %s956_s18 = sphi %s1002_s18, %s1329_s18   ;;  %s952_s17 = sphi %s1000_s17, %s1328_s17   ;;  %s948_s16 = sphi %s998_s16, %s1327_s16   ;;  %s944_s15 = sphi %s996_s15, %s1326_s15   ;;  %s940_s14 = sphi %s994_s14, %s1332_s14   ;;  %s936_s13 = sphi %s992_s13, %s1331_s13   ;;  %s932_s12 = sphi %s990_s12, %s1330_s12  }
   0xc   : > { %1303 = sst [smem:[#allocation16_spill]] %s956_s18  ;;  %s628_s21 = sadd.s32 4294967294, %s960_s19  }
   0xd   : > { %s44_s22 = sadd.s32 1, %s952_s17  ;;  %s48_s23 = sadd.s32 1, %s956_s18 }
   0xe   : > { %p46_p0 = scmp.ge.s32.totalorder %s44_s22, 4  ;;  %s59_s24 = sadd.s32 1, %s940_s14 }
   0xf   : > { %p66_p1 = scmp.ne.s32.totalorder %s940_s14, %s936_s13  ;;  %p67_p2 = scmp.eq.s32.totalorder %s960_s19, 0 }
  0x10   : > { %s1334_s22 = smov (%p46_p0, %s44_s22), 0  ;;  %s1336_s23 = smov (!%p46_p0, %s48_s23), %s956_s18 }
  0x11   : > { %1304 = sst [smem:[#allocation17_spill]] %s1334_s22  ;;  %s53_s25 = ssub.s32 %s952_s17, %s1334_s22 }
  0x12   : > { %p1045_p3 = por %p67_p2, %p66_p1  ;;  %p50_p4 = scmp.ge.s32.totalorder %s1336_s23, 2 }
  0x13   : > { %p72_p5 = scmp.ne.s32.totalorder %s936_s13, %s932_s12  ;;  %p73_p6 = scmp.eq.s32.totalorder %s1031_s20, 0 }
  0x14   : > { %p160_p7 = scmp.eq.s32.totalorder %s1031_s20, 7  ;;  %s1338_s23 = smov (%p50_p4, %s1336_s23), 0 }
  0x15   : > { %1306 = sst [smem:[#allocation18_spill]] %s1338_s23  ;;  %p1055_p8 = por %p73_p6, %p72_p5 }
  0x16   : > { %p1059_p9 = por %p160_p7, %p66_p1  ;;  %s52_s29 = ssub.s32 %s956_s18, %s1338_s23 }
  0x17   : > { %s1307_s27 = scalar_select %p1055_p8, 1, 0 }
  0x18   : > { %s1308_s28 = scalar_select %p1059_p9, 1, 0 }
  0x19   : > { %p166_p10 = scmp.eq.s32.totalorder %s628_s21, 7  ;;  %s54_s30 = sor.u32 %s53_s25, %s52_s29 }
  0x1a   : > { %p57_p11 = scmp.eq.s32.totalorder %s54_s30, 0  ;;  %p690_p13 = scmp.lt.s32.totalorder %s960_s19, 8 }
  0x1b   : > { %p1065_p12 = por %p166_p10, %p72_p5  ;;  %s1292_s5 = sand.u32 1, %s940_s14  }
  0x1c   : > { %s1072_s6 = scalar_select %p57_p11, %s940_s14, %s59_s24  }
  0x1d   : > { %s1309_s4 = scalar_select %p1065_p12, 1, 0 }
  0x1e   : > { %1311 = sst [smem:[#allocation20_spill]] %s1072_s6  ;;  %s1076_s7 = sshll.u32 %s1292_s5, 3 }
  0x1f   : > { %1310 = sst [smem:[#allocation19_spill]] %s1309_s4  ;;  %s632_s8 = sshll.u32 %s956_s18, 2 }
  0x20   : > { %s196_s9 = sadd.s32 %s952_s17, %s632_s8  ;;  %p1082_p0 = pnand %p690_p13, %p1045_p3 }
  0x21   : > { %s1086_s11 = sshll.u32 %s196_s9, 7  ;;  %s207_s21 = sand.u32 1, %s960_s19  }
  0x22   : > { %s1312_s10 = scalar_select %p1082_p0, 1, 0 }
  0x23   : > { %s1313_s1 = sld [smem:[#allocation21_spill]]  ;;  %s211_s30 = scalar_lea.vmem [#allocation8], %s1076_s7 }
  0x24   : > { %s221_s26 = sshll.u32 %s211_s30, 4  ;;  %s1100_s8 = scalar_lea.sflag [#allocation9], %s207_s21  ;;  %s1097_s26 = int_to_ptr.vmem [resolvable:$true] %s221_s26 }
  0x25   : > { %p1106_p4 = pneg %p1082_p0 }
  0x29   : > { %s1093_s24 = scalar_lea.hbm %s1313_s1, %s1086_s11  ;;  %s773_s30 = scalar_lea.hbm %s1313_s1, 1024 }
  0x2a   : > { %s768_s9 = scalar_lea.hbm %s1093_s24, 128  ;;  %p774_p7 = scmp.lt.u32.totalorder %s1093_s24, %s1313_s1 }
  0x2b   : > { %p769_p3 = scmp.ne.s32.totalorder %s1093_s24, %s768_s9  ;;  %p775_p10 = scmp.lt.u32.totalorder %s773_s30, %s768_s9 }
  0x2c   : > { %p777_p13 = scmp.lt.u32.totalorder %s768_s9, %s1093_s24 }
  0x2d   : > { %p771_p5 = pnand %p1106_p4, %p769_p3  ;;  %p776_p11 = por %p775_p10, %p774_p7 }
  0x2f   : > { %p772_p6 = pneg %p771_p5  ;;  %p778_p1 = por %p777_p13, %p776_p11 }
  0x31   : > { %p779_p2 = pnand %p778_p1, %p772_p6 }
  0x33   : > { %782 = shalt.err (!%p779_p2)
}
  0x34   : > { %s783_s21 = scalar_lea.vmem %s1097_s26, 128  ;;  %s962_s25 = smov [#allocation8]  }
  0x35   : > { %p784_p3 = scmp.ne.s32.totalorder %s1097_s26, %s783_s21  ;;  %s788_s29 = sshll.u32 %s962_s25, 4  ;;  %s789_s29 = int_to_ptr.vmem [resolvable:$false] %s788_s29 }
  0x36   : > { %s790_s22 = scalar_lea.vmem %s789_s29, 256  ;;  %p791_p9 = scmp.lt.s32.totalorder %s1097_s26, %s789_s29 }
  0x37   : > { %p786_p5 = pnand %p784_p3, %p1106_p4  ;;  %p792_p8 = scmp.lt.s32.totalorder %s790_s22, %s783_s21 }
  0x39   : > { %p787_p12 = pneg %p786_p5  ;;  %p793_p7 = por %p792_p8, %p791_p9 }
  0x3b   : > { %p794_p10 = pnand %p793_p7, %p787_p12 }
  0x3d   : > { %797 = shalt.err (!%p794_p10)
}
  0x3e   : > { %682 = dma.hbm_to_vmem [thread:$0]  (!%p1082_p0), %s1093_s24, 128, %s1097_s26, %s1100_s8  }
  0x3f   : > { %p1315_p1 = scmp.lt.s32.totalorder %s960_s19, 9  ;;  %p1316_p2 = scmp.ge.s32.totalorder %s960_s19, 1 }
  0x40   : > { %s1142_s21 = scalar_lea.hbm %s1288_s0, %s1086_s11  ;;  %s190_s25 = scalar_lea.vmem [#allocation5], %s1076_s7 }
  0x41   : > { %p1134_p6 = pnand %p1316_p2, %p1315_p1  ;;  %s200_s29 = sshll.u32 %s190_s25, 4  ;;  %s1145_s29 = int_to_ptr.vmem [resolvable:$true] %s200_s29 }
  0x42   : > { %s1151_s22 = scalar_lea.hbm %s1290_s2, %s1086_s11  ;;  %s1318_s1 = sand.u32 1, %s940_s14  }
  0x43   : > { %s1317_s23 = scalar_select %p1134_p6, 1, 0 }
  0x44   : > { %s187_s18 = scalar_lea.sflag [#allocation6], %s1318_s1  ;;  %s798_s17 = scalar_lea.hbm %s1142_s21, 128 }
  0x45   : > { %p799_p8 = scmp.ne.s32.totalorder %s1142_s21, %s798_s17  ;;  %s803_s6 = scalar_lea.hbm %s1288_s0, 1024 }
  0x46   : > { %p804_p11 = scmp.lt.u32.totalorder %s1142_s21, %s1288_s0  ;;  %p805_p13 = scmp.lt.u32.totalorder %s803_s6, %s798_s17 }
  0x47   : > { %p801_p9 = pnand %p799_p8, %p1106_p4  ;;  %p807_p5 = scmp.lt.u32.totalorder %s798_s17, %s1142_s21 }
  0x48   : > { %p806_p3 = por %p805_p13, %p804_p11 }
  0x49   : > { %p802_p12 = pneg %p801_p9 }
  0x4a   : > { %p808_p7 = por %p807_p5, %p806_p3 }
  0x4c   : > { %p809_p10 = pnand %p808_p7, %p802_p12 }
  0x4e   : > { %812 = shalt.err (!%p809_p10)
}
  0x4f   : > { %s813_s1 = scalar_lea.vmem %s1145_s29, 128  ;;  %s963_s11 = smov [#allocation5]  }
  0x50   : > { %p814_p1 = scmp.ne.s32.totalorder %s1145_s29, %s813_s1  ;;  %s818_s24 = sshll.u32 %s963_s11, 4  ;;  %s819_s24 = int_to_ptr.vmem [resolvable:$false] %s818_s24 }
  0x51   : > { %s820_s4 = scalar_lea.vmem %s819_s24, 256  ;;  %p821_p9 = scmp.lt.s32.totalorder %s1145_s29, %s819_s24 }
  0x52   : > { %p816_p2 = pnand %p814_p1, %p1106_p4  ;;  %p822_p6 = scmp.lt.s32.totalorder %s820_s4, %s813_s1 }
  0x54   : > { %p817_p8 = pneg %p816_p2  ;;  %p823_p11 = por %p822_p6, %p821_p9 }
  0x56   : > { %p824_p13 = pnand %p823_p11, %p817_p8 }
  0x58   : > { %827 = shalt.err (!%p824_p13)
}
  0x59   : > { %679 = dma.hbm_to_vmem [thread:$0]  (!%p1082_p0), %s1142_s21, 128, %s1145_s29, %s187_s18  }
  0x5a   : > { %s232_s17 = scalar_lea.vmem [#allocation10], %s1076_s7  ;;  %s828_s26 = scalar_lea.hbm %s1151_s22, 128 }
  0x5b   : > { %s242_s6 = sshll.u32 %s232_s17, 4  ;;  %p829_p12 = scmp.ne.s32.totalorder %s1151_s22, %s828_s26  ;;  %s243_s6 = int_to_ptr.vmem [resolvable:$true] %s242_s6 }
  0x5c   : > { %s833_s25 = scalar_lea.hbm %s1290_s2, 1024  ;;  %p834_p5 = scmp.lt.u32.totalorder %s1151_s22, %s1290_s2 }
  0x5d   : > { %p831_p6 = pnand %p829_p12, %p1106_p4  ;;  %p835_p7 = scmp.lt.u32.totalorder %s833_s25, %s828_s26 }
  0x5e   : > { %p837_p1 = scmp.lt.u32.totalorder %s828_s26, %s1151_s22 }
  0x5f   : > { %p832_p3 = pneg %p831_p6  ;;  %p836_p10 = por %p835_p7, %p834_p5 }
  0x61   : > { %p838_p2 = por %p837_p1, %p836_p10 }
  0x63   : > { %p839_p8 = pnand %p838_p2, %p832_p3 }
  0x65   : > { %842 = shalt.err (!%p839_p8)
}
  0x66   : > { %s843_s18 = scalar_lea.vmem %s243_s6, 128  ;;  %s964_s7 = smov [#allocation10]  }
  0x67   : > { %p844_p9 = scmp.ne.s32.totalorder %s243_s6, %s843_s18  ;;  %s848_s21 = sshll.u32 %s964_s7, 4  ;;  %s849_s21 = int_to_ptr.vmem [resolvable:$false] %s848_s21 }
  0x68   : > { %s850_s29 = scalar_lea.vmem %s849_s21, 256  ;;  %p851_p12 = scmp.lt.s32.totalorder %s243_s6, %s849_s21 }
  0x69   : > { %p846_p11 = pnand %p844_p9, %p1106_p4  ;;  %p852_p6 = scmp.lt.s32.totalorder %s850_s29, %s843_s18 }
  0x6b   : > { %p847_p13 = pneg %p846_p11  ;;  %p853_p0 = por %p852_p6, %p851_p12 }
  0x6d   : > { %p854_p5 = pnand %p853_p0, %p847_p13 }
  0x6f   : > { %857 = shalt.err (!%p854_p5)
}
  0x70   : > { %p1319_p7 = scmp.ne.s32.totalorder %s1312_s10, 0  ;;  %p1320_p3 = scmp.ne.s32.totalorder %s1317_s23, 0 }
  0x71   : > { %s1198_s5 = sand.u32 (!%p1320_p3), 1, %s936_s13   ;;  %p1321_p0 = scmp.ne.s32.totalorder (!%p1320_p3), %s1307_s27, 0 }
  0x72   : > { %685 = dma.hbm_to_vmem [thread:$0]  (!%p1319_p7), %s1151_s22, 128, %s243_s6, %s1100_s8  }
  0x73   : > { %251 = sbr.rel (%p1320_p3) target bundleno = 945 (0x3b1), region = 32  ;;  %s1201_s24 = sshll.u32 (!%p1320_p3), %s1198_s5, 3 }
  0x74   : > { %s254_s4 = scalar_lea.sflag (!%p1320_p3), [#allocation6], %s1198_s5  ;;  %s257_s17 = scalar_lea.vmem (!%p1320_p3), [#allocation5], %s1201_s24 }
  0x7a   : > { %919 = dma.done.wait (%p1321_p0), %s254_s4, 128  }
  0x7b   : > { %921 = vsyncadd (%p1321_p0), %s254_s4, 4294967168  ;;  %s262_s10 = sand.u32 1, %s1031_s20   ;;  %s266_s23 = scalar_lea.vmem [#allocation8], %s1201_s24 }
  0x7c   : > { %s263_s8 = scalar_lea.sflag [#allocation9], %s262_s10 }
  0x7d   : > { %923 = dma.done.wait (%p1321_p0), %s263_s8, 256  }
  0x7e   : > { %925 = vsyncadd (%p1321_p0), %s263_s8, 4294967040  ;;  %vm316_vm0 = vcmask 261120   ;;  %v965_v0 = vmov 0.0   ;;  %vm966_vm1 = vmmov 0   ;;  %v321_v1 = vld [vmem:[%s266_s23] sm:$0xff]  ;;  %v318_v2 = vld [vmem:[%s257_s17] sm:$0xff] }
  0x7f   : > { %656 = vmatprep.subr.bf16.mxu0 %v965_v0  ;;  %317 = vst.msk [vmem:[#allocation4] sm:$0xff] %vm316_vm0, %v965_v0  ;;  %658 = vmatprep.mubr.msk.bf16.mxu0 %vm966_vm1, %v965_v0  ;;  %v322_v3 = vpack.c.bf16 %v321_v1, %v321_v1  ;;  %v319_v5 = vmul.f32 0.17677669, %v318_v2  ;;  %vm313_vm2 = vcmask 7168   ;;  %v967_v7 = vmov -1e+30  }
  0x80   : > { %662 = vmatprep.subr.bf16.mxu1 %v965_v0  ;;  %664 = vmatprep.mubr.msk.bf16.mxu1 %vm966_vm1, %v965_v0  ;;  %314 = vst.msk [vmem:[#allocation2] sm:$0xff] %vm313_vm2, %v967_v7  ;;  %315 = vst.msk [vmem:[#allocation3] sm:$0xff] %vm313_vm2, %v965_v0  ;;  %vm373_vm3 = vcmask 64512   ;;  %v968_v13 = vmov 0   ;;  %s275_s20 = scalar_lea.vmem [#allocation10], %s1201_s24  ;;  %vm408_vm4 = vcmask 1043456  }
  0x81   : > { %v330_v4 = vsel %vm316_vm0, %v322_v3, 0  ;;  %v320_v6 = vpack.c.bf16 %v319_v5, %v319_v5  ;;  %760 = vset.pattern.permute.xlu0 %v968_v13  ;;  %761 = vset.pattern.permute.xlu1 %v968_v13  ;;  %v323_v18 = vld [vmem:[%s275_s20] sm:$0xff]  ;;  %s648_s27 = sshll.u32 %s948_s16, 2  ;;  %s307_s26 = scalar_lea.vmem [#allocation11], %s1201_s24 }
  0x82   : > { %657 = vmatpush3.bf16.xpose.msra.mxu0 %v330_v4  ;;  %v324_v19 = vpack.c.bf16 %v323_v18, %v323_v18  ;;  %s481_s22 = sadd.s32 %s944_s15, %s648_s27  ;;  %s485_s9 = sshll.u32 %s307_s26, 4  ;;  %s1235_s9 = int_to_ptr.vmem [resolvable:$true] %s485_s9 }
  0x83   : > { %s649_s6 = sshll.u32 %s481_s22, 7  ;;  %s469_s16 = scalar_lea.sflag [#allocation7], %s1198_s5 }
  0x84   : > { %v410_v20 = vsel %vm408_vm4, %v324_v19, 0  ;;  %s1233_s1 = scalar_lea.hbm %s1291_s3, %s649_s6  ;;  %s858_s15 = scalar_lea.vmem %s1235_s9, 128 }
  0x85   : > { %663 = vmatpush3.bf16.msra.mxu1 %v410_v20  ;;  %p859_p4 = scmp.ne.s32.totalorder %s1235_s9, %s858_s15  ;;  %p1322_p10 = scmp.ne.s32.totalorder %s1308_s28, 0 }
  0x86   : > { %v397_v34 = vld [vmem:[#allocation4] sm:$0xff]  ;;  %s969_s11 = smov [#allocation11]  }
  0x87   : > { %v372_v14 = vld [vmem:[#allocation2] sm:$0xff]  ;;  %v389_v29 = vld [vmem:[#allocation3] sm:$0xff]  ;;  %p860_p1 = pnand %p859_p4, %p1322_p10  ;;  %s862_s18 = sshll.u32 %s969_s11, 4  ;;  %s863_s18 = int_to_ptr.vmem [resolvable:$false] %s862_s18 }
  0x88   : > { %s864_s7 = scalar_lea.vmem %s863_s18, 256  ;;  %p865_p8 = scmp.lt.s32.totalorder %s1235_s9, %s863_s18 }
  0x89   : > { %659 = vmatmul.mubr.msk.bf16.vlgmr.msra.gmra.mrb[0].mxu0 %vm316_vm0, %v320_v6  ;;  %p861_p2 = pneg %p860_p1  ;;  %p866_p9 = scmp.lt.s32.totalorder %s864_s7, %s858_s15 }
  0x8b   : > { %p867_p11 = por %p866_p9, %p865_p8 }
  0x8d   : > { %p868_p13 = pnand %p867_p11, %p861_p2 }
 0x15c   : > { %v366_v8 = vpop.f32.mrb[0].mxu0 }
 0x15d   : > { %v660_v9 = vpop.f32.mrb[1].mxu0  ;;  %v374_v10 = vsel %vm373_vm3, %v366_v8, -inf }
 0x15e   : > { %375 = vmax.xlane.f32.xlu0 %v374_v10  ;;  %v369_v11 = vpop.f32.mrb[2].mxu0 }
 0x15f   : > { %v661_v12 = vpop.f32.mrb[3].mxu0 }
 0x1eb   : > { %v376_v15 = vpop.xlane.xlu0 %375 }
 0x1ec   : > { %v377_v16 = vmax.f32 %v372_v14, %v376_v15 }
 0x1ee   : > { %v378_v17 = vsub.f32 %v372_v14, %v377_v16  ;;  %454 = vst.msk [vmem:[#allocation2] sm:$0xff] %vm313_vm2, %v377_v16  ;;  %383 = vperm.xlu0 %760, %v377_v16  }
 0x1f0   : > { %v379_v27 = vmul.f32 1.442695, %v378_v17 }
 0x26d   : > { %v384_v21 = vpop.permute.xlu0 %383 }
 0x26e   : > { %v386_v22 = vsub.f32 %v366_v8, %v384_v21 }
 0x270   : > { %v387_v23 = vmul.f32 1.442695, %v386_v22 }
 0x272   : > { %762 = vpow2.f32 %v387_v23 }
 0x273   : > { %764 = vpow2.f32 %v379_v27 }
 0x27c   : > { %v763_v24 = vpop.eup %762 }
 0x27d   : > { %v391_v25 = vsel %vm373_vm3, %v763_v24, 0.0  ;;  %v404_v26 = vpack.c.bf16 %v763_v24, %v763_v24  ;;  %v765_v28 = vpop.eup %764 }
 0x27e   : > { %392 = vadd.xlane.f32.xlu1 %v391_v25  ;;  %v390_v30 = vmul.f32 %v765_v28, %v389_v29 }
 0x27f   : > { %665 = vmatmul.mubr.msk.bf16.vlgmr.msra.gmra.mrb[0].mxu1 %vm373_vm3, %v404_v26 }
 0x28f   : > { %400 = vperm.xlu1 %761, %v765_v28  }
 0x30b   : > { %v393_v31 = vpop.xlane.xlu1 %392 }
 0x30c   : > { %v394_v32 = vadd.f32 %v393_v31, %v390_v30 }
 0x30e   : > { %396 = vst.msk [vmem:[#allocation3] sm:$0xff] %vm313_vm2, %v394_v32 }
 0x30f   : > { %v401_v35 = vpop.permute.xlu1 %400 }
 0x310   : > { %v403_v36 = vmul.f32 %v401_v35, %v397_v34 }
 0x315   : > { %v459_v33 = vld [vmem:[#allocation3] sm:$0xff] }
 0x316   : > { %462 = vperm.xlu1 %761, %v459_v33  }
 0x352   : > { %v446_v37 = vpop.f32.mrb[0].mxu1 }
 0x353   : > { %v452_v38 = vadd.f32 %v446_v37, %v403_v36  ;;  %v666_v39 = vpop.f32.mrb[1].mxu1 }
 0x354   : > { %v449_v40 = vpop.f32.mrb[2].mxu1 }
 0x355   : > { %453 = vst.msk [vmem:[#allocation4] sm:$0xff] %vm316_vm0, %v452_v38  ;;  %v667_v41 = vpop.f32.mrb[3].mxu1 }
 0x35c   : > { %v458_v44 = vld [vmem:[#allocation4] sm:$0xff] }
 0x395   : > { %v463_v42 = vpop.permute.xlu1 %462 }
 0x396   : > { %766 = vrcp.f32 %v463_v42 }
 0x3a0   : > { %v767_v43 = vpop.eup %766 }
 0x3a1   : > { %v466_v45 = vmul.f32 %v767_v43, %v458_v44 }
 0x3a3   : > { %467 = vst.msk [vmem:[%s307_s26] sm:$0xff] %vm316_vm0, %v466_v45 }
 0x3a4   : > { %871 = shalt.err (!%p868_p13)
}
 0x3a5   : > { %s872_s21 = scalar_lea.hbm %s1233_s1, 128  ;;  %s876_s24 = scalar_lea.hbm %s1291_s3, 1024 }
 0x3a6   : > { %p873_p12 = scmp.ne.s32.totalorder %s1233_s1, %s872_s21  ;;  %p877_p7 = scmp.lt.u32.totalorder %s1233_s1, %s1291_s3 }
 0x3a7   : > { %p878_p3 = scmp.lt.u32.totalorder %s876_s24, %s872_s21  ;;  %p880_p4 = scmp.lt.u32.totalorder %s872_s21, %s1233_s1 }
 0x3a8   : > { %p874_p6 = pnand %p873_p12, %p1322_p10 }
 0x3a9   : > { %p879_p0 = por %p878_p3, %p877_p7 }
 0x3aa   : > { %p875_p5 = pneg %p874_p6 }
 0x3ab   : > { %p881_p1 = por %p880_p4, %p879_p0 }
 0x3ad   : > { %p882_p2 = pnand %p881_p1, %p875_p5 }
 0x3af   : > { %885 = shalt.err (!%p882_p2)
}
 0x3b0   : > { %674 = dma.vmem_to_hbm [thread:$0]  (%p1322_p10), %s1235_s9, 128, %s1233_s1, %s469_s16  }
 0x3b1 PF: > { %s1323_s10 = sld [smem:[#allocation19_spill]]  ;;  %p691_p8 = scmp.ge.s32.totalorder %s960_s19, 2 }
 0x3b2   : > { %s497_s8 = sand.u32 1, %s932_s12  }
 0x3b3   : > { %s498_s23 = scalar_lea.sflag [#allocation7], %s497_s8 }
 0x3b7   : > { %p1324_p9 = scmp.ne.s32.totalorder %s1323_s10, 0 }
 0x3b9   : > { %p687_p11 = pnand %p691_p8, %p1324_p9 }
 0x3bb   : > { %927 = dma.done.wait (!%p687_p11), %s498_s23, 128  }
 0x3bc   : > { %929 = vsyncadd (!%p687_p11), %s498_s23, 4294967168  ;;  %s22_s19 = sadd.s32 1, %s960_s19   ;;  %s1325_s28 = sld [smem:[#allocation20_spill]] }
 0x3bd   : > { %p19_p13 = scmp.ge.s32.totalorder %s22_s19, 10   ;;  %s1326_s15 = sld [smem:[#allocation15_spill]] }
 0x3be   : > { %s1327_s16 = sld [smem:[#allocation16_spill]]  ;;  %s1328_s17 = sld [smem:[#allocation17_spill]] }
 0x3bf   : > { %s1329_s18 = sld [smem:[#allocation18_spill]]  ;;  %s1330_s12 = smov %s936_s13 }
 0x3c0   : > { %s1331_s13 = smov %s940_s14  ;;  %21 = sbr.rel (!%p19_p13) target bundleno = 11 (0xb), region = 109 }
 0x3c2   : > { %s1332_s14 = smov %s1325_s28 }
 0x3c7   :  { %503 = vsyncpa [#allocation6], 1 }
 0x3c8   :  { %505 = vsyncpa [#allocation6 + $0x1], 1 }
 0x3c9   :  { %506 = vsyncpa [#allocation9], 1 }
 0x3ca   :  { %508 = vsyncpa [#allocation9 + $0x1], 1 }
 0x3cb   :  { %509 = vsyncpa [#allocation7], 1 }
 0x3cc   :  { %511 = vsyncpa [#allocation7 + $0x1], 1 }

</bundles_post_ra>
